<compile_context>
chip_gen: v6e
topology: v6e:2x2x1
jax: 0.10.0
libtpu: 0.0.40
codegen_flags: <defaults>
</compile_context>

<pallas_src>
import jax
import jax.numpy as jnp
from jax.experimental import pallas as pl
from jax.experimental.pallas import tpu as pltpu

INPUT_DIM = 28 * 28            # 784
HIDDEN_DIM = int(784 / 5)      # 156
OUTPUT_DIM = 10

LANES = 128


def _round_up(n, m):
    return ((n + m - 1) // m) * m


HIDDEN_PAD = _round_up(HIDDEN_DIM, LANES)   # 256
OUTPUT_PAD = _round_up(OUTPUT_DIM, LANES)   # 128


def mlp_kernel(x_ref, w1_ref, b1_ref, w2_ref, b2_ref, o_ref):
    # fc1 (bf16 inputs, f32 accumulation) + bias + ReLU in f32
    h = jnp.dot(x_ref[...], w1_ref[...], preferred_element_type=jnp.float32)
    h = jnp.maximum(h + b1_ref[...], 0.0)
    # fc2 (cast activations back to bf16 for the MXU, accumulate in f32)
    o = jnp.dot(h.astype(jnp.bfloat16), w2_ref[...],
                preferred_element_type=jnp.float32)
    o_ref[...] = jnp.maximum(o + b2_ref[...], 0.0).astype(o_ref.dtype)


def mlp_forward(x, w1, b1, w2, b2, *, tb=256):
    """x: (B, 784) f32; w1: (784, 156); b1: (156,); w2: (156, 10); b2: (10,).
    Returns (B, 10) f32."""
    B = x.shape[0]
    # Small batches: single grid step whose block equals the (padded) array.
    if B <= tb:
        tb = _round_up(B, 16)
    b_pad = _round_up(B, tb)
    grid = (b_pad // tb,)

    # Zero-pad to lane-dense shapes and cast operands feeding the MXU to bf16.
    xp = jnp.pad(x, ((0, b_pad - B), (0, 0))).astype(jnp.bfloat16)
    w1p = jnp.pad(w1, ((0, 0), (0, HIDDEN_PAD - HIDDEN_DIM))).astype(jnp.bfloat16)
    b1p = jnp.pad(b1, (0, HIDDEN_PAD - HIDDEN_DIM)).reshape(1, HIDDEN_PAD).astype(jnp.float32)
    w2p = jnp.pad(w2, ((0, HIDDEN_PAD - HIDDEN_DIM),
                       (0, OUTPUT_PAD - OUTPUT_DIM))).astype(jnp.bfloat16)
    b2p = jnp.pad(b2, (0, OUTPUT_PAD - OUTPUT_DIM)).reshape(1, OUTPUT_PAD).astype(jnp.float32)

    out = pl.pallas_call(
        mlp_kernel,
        out_shape=jax.ShapeDtypeStruct((b_pad, OUTPUT_PAD), jnp.float32),
        grid=grid,
        in_specs=[
            # x tiles stream over the batch axis; weights/biases stay resident.
            pl.BlockSpec((tb, INPUT_DIM), lambda i: (i, 0)),
            pl.BlockSpec((INPUT_DIM, HIDDEN_PAD), lambda i: (0, 0)),
            pl.BlockSpec((1, HIDDEN_PAD), lambda i: (0, 0)),
            pl.BlockSpec((HIDDEN_PAD, OUTPUT_PAD), lambda i: (0, 0)),
            pl.BlockSpec((1, OUTPUT_PAD), lambda i: (0, 0)),
        ],
        out_specs=pl.BlockSpec((tb, OUTPUT_PAD), lambda i: (i, 0)),
        compiler_params=pltpu.CompilerParams(
            dimension_semantics=("parallel",),          # batch axis: no accumulator
            vmem_limit_bytes=32 * 1024 * 1024),         # safe on v5e/v6e/v7x
    )(xp, w1p, b1p, w2p, b2p)

    return out[:B, :OUTPUT_DIM]


def init_params(key):
    """Deterministic init mirroring nn.Linear shapes (weights stored as [in, out])."""
    k1, k2, k3, k4 = jax.random.split(key, 4)
    bound1 = 1.0 / jnp.sqrt(INPUT_DIM)
    bound2 = 1.0 / jnp.sqrt(HIDDEN_DIM)
    w1 = jax.random.uniform(k1, (INPUT_DIM, HIDDEN_DIM), jnp.float32, -bound1, bound1)
    b1 = jax.random.uniform(k2, (HIDDEN_DIM,), jnp.float32, -bound1, bound1)
    w2 = jax.random.uniform(k3, (HIDDEN_DIM, OUTPUT_DIM), jnp.float32, -bound2, bound2)
    b2 = jax.random.uniform(k4, (OUTPUT_DIM,), jnp.float32, -bound2, bound2)
    return w1, b1, w2, b2


if __name__ == "__main__":
    key = jax.random.PRNGKey(0)
    kx, kp = jax.random.split(key)

    batch = 8
    x = jax.random.normal(kx, (batch, INPUT_DIM), jnp.float32)
    w1, b1, w2, b2 = init_params(kp)

    out = mlp_forward(x, w1, b1, w2, b2)
    out = jax.block_until_ready(out)
    assert out.shape == (batch, OUTPUT_DIM)

    # f32 reference (same math as the PyTorch module); loose tolerance because the
    # kernel uses bf16 operands with f32 accumulation.
    ref_f32 = jnp.maximum(jnp.maximum(x @ w1 + b1, 0.0) @ w2 + b2, 0.0)
    assert jnp.allclose(out, ref_f32, atol=2e-2, rtol=2e-2)

    # bf16-cast reference (matches kernel precision) -> tight tolerance.
    xb = x.astype(jnp.bfloat16)
    w1b = w1.astype(jnp.bfloat16)
    w2b = w2.astype(jnp.bfloat16)
    h_ref = jnp.maximum(
        jnp.dot(xb, w1b, preferred_element_type=jnp.float32) + b1, 0.0)
    ref_bf16 = jnp.maximum(
        jnp.dot(h_ref.astype(jnp.bfloat16), w2b,
                preferred_element_type=jnp.float32) + b2, 0.0)
    assert jnp.allclose(out, ref_bf16, atol=1e-3, rtol=1e-3)

    print("KERNEL_OK")
</pallas_src>

<mosaic_0001>
module attributes {stable_mosaic.version = 11 : i64} {
  func.func @mlp_kernel(%arg0: i32, %arg1: memref<16x784xbf16, #tpu.memory_space<vmem>>, %arg2: memref<784x256xbf16, #tpu.memory_space<vmem>>, %arg3: memref<1x256xf32, #tpu.memory_space<vmem>>, %arg4: memref<256x128xbf16, #tpu.memory_space<vmem>>, %arg5: memref<1x128xf32, #tpu.memory_space<vmem>>, %arg6: memref<16x128xf32, #tpu.memory_space<vmem>>) attributes {dimension_semantics = [#tpu.dimension_semantics<parallel>], iteration_bounds = array<i64: 1>, scalar_prefetch = 0 : i64, scratch_operands = 0 : i64, tpu.core_type = #tpu.core_type<tc>, window_params = [{transform_indices = @transform_0, window_bounds = array<i64: 16, 784>}, {pipeline_mode = #tpu.pipeline_mode<synchronous>, transform_indices = @transform_1, window_bounds = array<i64: 784, 256>}, {pipeline_mode = #tpu.pipeline_mode<synchronous>, transform_indices = @transform_2, window_bounds = array<i64: 1, 256>}, {pipeline_mode = #tpu.pipeline_mode<synchronous>, transform_indices = @transform_3, window_bounds = array<i64: 256, 128>}, {pipeline_mode = #tpu.pipeline_mode<synchronous>, transform_indices = @transform_4, window_bounds = array<i64: 1, 128>}, {transform_indices = @transform_5, window_bounds = array<i64: 16, 128>}]} {
    %c0 = arith.constant 0 : index
    %c0_0 = arith.constant 0 : index
    %0 = vector.load %arg1[%c0, %c0_0] : memref<16x784xbf16, #tpu.memory_space<vmem>>, vector<16x784xbf16>
    %c0_1 = arith.constant 0 : index
    %c0_2 = arith.constant 0 : index
    %1 = vector.load %arg2[%c0_1, %c0_2] : memref<784x256xbf16, #tpu.memory_space<vmem>>, vector<784x256xbf16>
    %cst = arith.constant dense<0.000000e+00> : vector<16x256xf32>
    %2 = tpu.matmul %0, %1, %cst {dimension_numbers = #tpu.dot_dimension_numbers<[1], [0], [0], [1], [0, 0, 1, 1], [], []>} : vector<16x784xbf16>, vector<784x256xbf16>, vector<16x256xf32> -> vector<16x256xf32>
    %c0_3 = arith.constant 0 : index
    %c0_4 = arith.constant 0 : index
    %3 = vector.load %arg3[%c0_3, %c0_4] : memref<1x256xf32, #tpu.memory_space<vmem>>, vector<1x256xf32>
    %4 = vector.broadcast %3 : vector<1x256xf32> to vector<16x256xf32>
    %5 = arith.addf %2, %4 : vector<16x256xf32>
    %cst_5 = arith.constant 0.000000e+00 : f32
    %6 = vector.broadcast %cst_5 : f32 to vector<16x256xf32>
    %7 = arith.maximumf %5, %6 : vector<16x256xf32>
    %8 = arith.truncf %7 : vector<16x256xf32> to vector<16x256xbf16>
    %c0_6 = arith.constant 0 : index
    %c0_7 = arith.constant 0 : index
    %9 = vector.load %arg4[%c0_6, %c0_7] : memref<256x128xbf16, #tpu.memory_space<vmem>>, vector<256x128xbf16>
    %cst_8 = arith.constant dense<0.000000e+00> : vector<16x128xf32>
    %10 = tpu.matmul %8, %9, %cst_8 {dimension_numbers = #tpu.dot_dimension_numbers<[1], [0], [0], [1], [0, 0, 1, 1], [], []>} : vector<16x256xbf16>, vector<256x128xbf16>, vector<16x128xf32> -> vector<16x128xf32>
    %c0_9 = arith.constant 0 : index
    %c0_10 = arith.constant 0 : index
    %11 = vector.load %arg5[%c0_9, %c0_10] : memref<1x128xf32, #tpu.memory_space<vmem>>, vector<1x128xf32>
    %12 = vector.broadcast %11 : vector<1x128xf32> to vector<16x128xf32>
    %13 = arith.addf %10, %12 : vector<16x128xf32>
    %cst_11 = arith.constant 0.000000e+00 : f32
    %14 = vector.broadcast %cst_11 : f32 to vector<16x128xf32>
    %15 = arith.maximumf %13, %14 : vector<16x128xf32>
    %c0_12 = arith.constant 0 : index
    %c0_13 = arith.constant 0 : index
    %16 = vector.load %arg6[%c0_12, %c0_13] : memref<16x128xf32, #tpu.memory_space<vmem>>, vector<16x128xf32>
    tpu.vector_store %arg6[%c0_12, %c0_13], %15 {strides = array<i32>} : memref<16x128xf32, #tpu.memory_space<vmem>>, vector<16x128xf32>,
    return
  }
  func.func @transform_0(%arg0: i32) -> (i32, i32) {
    %c0_i32 = arith.constant 0 : i32
    %c0_i32_0 = arith.constant 0 : i32
    return %arg0, %c0_i32 : i32, i32
  }
  func.func @transform_1(%arg0: i32) -> (i32, i32) {
    %c0_i32 = arith.constant 0 : i32
    %c0_i32_0 = arith.constant 0 : i32
    %c0_i32_1 = arith.constant 0 : i32
    return %c0_i32, %c0_i32_0 : i32, i32
  }
  func.func @transform_2(%arg0: i32) -> (i32, i32) {
    %c0_i32 = arith.constant 0 : i32
    %c0_i32_0 = arith.constant 0 : i32
    %c0_i32_1 = arith.constant 0 : i32
    return %c0_i32, %c0_i32_0 : i32, i32
  }
  func.func @transform_3(%arg0: i32) -> (i32, i32) {
    %c0_i32 = arith.constant 0 : i32
    %c0_i32_0 = arith.constant 0 : i32
    %c0_i32_1 = arith.constant 0 : i32
    return %c0_i32, %c0_i32_0 : i32, i32
  }
  func.func @transform_4(%arg0: i32) -> (i32, i32) {
    %c0_i32 = arith.constant 0 : i32
    %c0_i32_0 = arith.constant 0 : i32
    %c0_i32_1 = arith.constant 0 : i32
    return %c0_i32, %c0_i32_0 : i32, i32
  }
  func.func @transform_5(%arg0: i32) -> (i32, i32) {
    %c0_i32 = arith.constant 0 : i32
    %c0_i32_0 = arith.constant 0 : i32
    return %arg0, %c0_i32 : i32, i32
  }
}

</mosaic_0001>

<bundles_post_ra>
// kernel: tpu_custom_call.1
= control target key start
LH: loop header
LB: loop body
LE: loop exit
PB: predicated region body
PF: predicated region fallthrough
CT: control target
= control target key end

     0   :  { %10 = vsyncpa [#allocation3], 0  ;;  %s1566_s0 = inlined_call_operand.hbm [shape: bf16[16,784], index: 0, kind: input, shape index: {}]   ;;  %s1567_s1 = inlined_call_operand.hbm [shape: bf16[784,256], index: 1, kind: input, shape index: {}]   ;;  %s1568_s2 = inlined_call_operand.vmem [shape: f32[1,256], index: 2, kind: input, shape index: {}]   ;;  %s1569_s3 = inlined_call_operand.hbm [shape: bf16[256,128], index: 3, kind: input, shape index: {}]   ;;  %s1570_s4 = inlined_call_operand.vmem [shape: f32[1,128], index: 4, kind: input, shape index: {}]   ;;  %s1571_s5 = inlined_call_operand.hbm [shape: f32[16,128], index: 5, kind: output, shape index: {}]  }
   0x1   :  { %11 = vsyncpa [#allocation6], 0 }
   0x2   :  { %12 = vsyncpa [#allocation4], 0  ;;  %s1501_s18 = smov [#allocation5]  }
   0x3   :  { %s30_s19 = sshll.u32 %s1501_s18, 4  ;;  %s31_s19 = int_to_ptr.vmem [resolvable:$true] %s30_s19 }
   0x4   :  { %s1423_s20 = scalar_lea.vmem %s31_s19, 12544  ;;  %p1428_p1 = scmp.lt.s32.totalorder %s31_s19, %s31_s19 }
   0x5   :  { %p1424_p0 = scmp.ne.s32.totalorder %s31_s19, %s1423_s20  ;;  %p1429_p2 = scmp.lt.s32.totalorder %s1423_s20, %s1423_s20 }
   0x7   :  { %p1430_p3 = por %p1429_p2, %p1428_p1 }
   0x9   :  { %p1431_p4 = pnand %p1430_p3, %p1424_p0 }
   0xb   :  { %1434 = shalt.err (!%p1431_p4)
}
   0xc   :  { %s1502_s21 = smov 128   ;;  %s1503_s22 = smov 8  }
   0xd   :  { %36 = dma.hbm_to_vmem [thread:$0]  %s1567_s1, 12544, %s31_s19, [#allocation6], %s1502_s21, %s1502_s21, %s1503_s22  }
   0xe   :  { %s1504_s25 = smov [#allocation2]  }
   0xf   :  { %s18_s26 = sshll.u32 %s1504_s25, 4  ;;  %s19_s26 = int_to_ptr.vmem [resolvable:$true] %s18_s26 }
  0x10   :  { %s1443_s27 = scalar_lea.vmem %s19_s26, 896  ;;  %p1448_p6 = scmp.lt.s32.totalorder %s19_s26, %s19_s26 }
  0x11   :  { %p1444_p5 = scmp.ne.s32.totalorder %s19_s26, %s1443_s27  ;;  %p1449_p7 = scmp.lt.s32.totalorder %s1443_s27, %s1443_s27 }
  0x13   :  { %p1450_p8 = por %p1449_p7, %p1448_p6 }
  0x15   :  { %p1451_p9 = pnand %p1450_p8, %p1444_p5 }
  0x17   :  { %1454 = shalt.err (!%p1451_p9)
}
  0x18   :  { %s1505_s28 = smov 448   ;;  %s1506_s29 = smov 28  }
  0x19   :  { %24 = dma.hbm_to_vmem [thread:$0]  %s1566_s0, 896, %s19_s26, [#allocation3], %s1505_s28, %s1505_s28, %s1506_s29  }
  0x1a   :  { %s1507_s7 = smov [#allocation7]  }
  0x1b   :  { %s44_s8 = sshll.u32 %s1507_s7, 4  ;;  %s45_s8 = int_to_ptr.vmem [resolvable:$true] %s44_s8 }
  0x1c   :  { %s1463_s1 = scalar_lea.vmem %s45_s8, 2048  ;;  %p1468_p11 = scmp.lt.s32.totalorder %s45_s8, %s45_s8 }
  0x1d   :  { %p1464_p10 = scmp.ne.s32.totalorder %s45_s8, %s1463_s1  ;;  %p1469_p12 = scmp.lt.s32.totalorder %s1463_s1, %s1463_s1 }
  0x1f   :  { %p1470_p13 = por %p1469_p12, %p1468_p11 }
  0x21   :  { %p1471_p0 = pnand %p1470_p13, %p1464_p10 }
  0x23   :  { %1474 = shalt.err (!%p1471_p0)
}
  0x24   :  { %s1508_s9 = smov 64   ;;  %s1509_s10 = smov 4  }
  0x25   :  { %50 = dma.hbm_to_vmem [thread:$0]  %s1569_s3, 2048, %s45_s8, [#allocation6], %s1508_s9, %s1508_s9, %s1509_s10  }
  0x26   :  { %1495 = dma.done.wait [#allocation3], 896  }
  0x27   :  { %1496 = vsyncadd [#allocation3], 4294966400 }
  0x28   :  { %1497 = dma.done.wait [#allocation6], 14592  }
  0x29   :  { %1498 = vsyncadd [#allocation6], 4294952704  ;;  %v1242_v0 = vld [vmem:[#allocation5 + $0x74] ss:$8 sps:$4 sm:$0xff]   ;;  %v1244_v1 = vld [vmem:[#allocation5 + $0x70] ss:$8 sps:$4 sm:$0xff]  }
  0x2a   :  { %710 = vmatprep.subr.bf16.mxu0 %v1242_v0  ;;  %v1245_v2 = vld [vmem:[#allocation5 + $0x174] ss:$8 sps:$4 sm:$0xff]   ;;  %v1247_v3 = vld [vmem:[#allocation5 + $0x170] ss:$8 sps:$4 sm:$0xff]   ;;  %v1248_v4 = vld [vmem:[#allocation5 + $0x64] ss:$8 sps:$4 sm:$0xff]  }
  0x2b   :  { %711 = vmatpush1.bf16.msra.mxu0 %v1244_v1  ;;  %v1250_v5 = vld [vmem:[#allocation5 + $0x60] ss:$8 sps:$4 sm:$0xff]   ;;  %753 = vmatprep.subr.bf16.mxu1 %v1245_v2  ;;  %v1251_v6 = vld [vmem:[#allocation5 + $0x164] ss:$8 sps:$4 sm:$0xff]   ;;  %v1254_v8 = vld [vmem:[#allocation5 + $0x54] ss:$8 sps:$4 sm:$0xff]  }
  0x2c   :  { %754 = vmatpush1.bf16.msra.mxu1 %v1247_v3  ;;  %712 = vmatprep.subr.bf16.mxu0 %v1248_v4  ;;  %v1253_v7 = vld [vmem:[#allocation5 + $0x160] ss:$8 sps:$4 sm:$0xff]   ;;  %v1256_v9 = vld [vmem:[#allocation5 + $0x50] ss:$8 sps:$4 sm:$0xff]   ;;  %v1257_v10 = vld [vmem:[#allocation5 + $0x154] ss:$8 sps:$4 sm:$0xff]  }
  0x2d   :  { %755 = vmatprep.subr.bf16.mxu1 %v1251_v6  ;;  %v1260_v11 = vld [vmem:[#allocation5 + $0x44] ss:$8 sps:$4 sm:$0xff]   ;;  %v1259_v12 = vld [vmem:[#allocation5 + $0x150] ss:$8 sps:$4 sm:$0xff]   ;;  %v1262_v14 = vld [vmem:[#allocation5 + $0x40] ss:$8 sps:$4 sm:$0xff]  }
  0x2e   :  { %v1263_v13 = vld [vmem:[#allocation5 + $0x144] ss:$8 sps:$4 sm:$0xff]   ;;  %v1266_v15 = vld [vmem:[#allocation5 + $0x34] ss:$8 sps:$4 sm:$0xff]   ;;  %v1265_v16 = vld [vmem:[#allocation5 + $0x140] ss:$8 sps:$4 sm:$0xff]  }
  0x2f   :  { %713 = vmatpush1.bf16.msra.mxu0 %v1250_v5  ;;  %v1269_v17 = vld [vmem:[#allocation5 + $0x134] ss:$8 sps:$4 sm:$0xff]   ;;  %v1268_v18 = vld [vmem:[#allocation5 + $0x30] ss:$8 sps:$4 sm:$0xff]   ;;  %v1272_v19 = vld [vmem:[#allocation5 + $0x24] ss:$8 sps:$4 sm:$0xff]  }
  0x30   :  { %714 = vmatprep.subr.bf16.mxu0 %v1254_v8  ;;  %756 = vmatpush1.bf16.msra.mxu1 %v1253_v7  ;;  %v1271_v20 = vld [vmem:[#allocation5 + $0x130] ss:$8 sps:$4 sm:$0xff]   ;;  %v1275_v21 = vld [vmem:[#allocation5 + $0x124] ss:$8 sps:$4 sm:$0xff]   ;;  %v1274_v22 = vld [vmem:[#allocation5 + $0x20] ss:$8 sps:$4 sm:$0xff]  }
  0x31   :  { %757 = vmatprep.subr.bf16.mxu1 %v1257_v10  ;;  %v1278_v23 = vld [vmem:[#allocation5 + $0x14] ss:$8 sps:$4 sm:$0xff]   ;;  %v1277_v24 = vld [vmem:[#allocation5 + $0x120] ss:$8 sps:$4 sm:$0xff]   ;;  %v1280_v26 = vld [vmem:[#allocation5 + $0x10] ss:$8 sps:$4 sm:$0xff]  }
  0x32   :  { %v1281_v25 = vld [vmem:[#allocation5 + $0x114] ss:$8 sps:$4 sm:$0xff]   ;;  %v1284_v27 = vld [vmem:[#allocation5 + $0x4] ss:$8 sps:$4 sm:$0xff]   ;;  %v1283_v28 = vld [vmem:[#allocation5 + $0x110] ss:$8 sps:$4 sm:$0xff]  }
  0x33   :  { %715 = vmatpush1.bf16.msra.mxu0 %v1256_v9  ;;  %v1287_v29 = vld [vmem:[#allocation5 + $0x104] ss:$8 sps:$4 sm:$0xff]   ;;  %v1286_v30 = vld [vmem:[#allocation5] ss:$8 sps:$4 sm:$0xff]   ;;  %v1290_v31 = vld [vmem:[#allocation5 + $0xf4] ss:$8 sps:$4 sm:$0xff]  }
  0x34   :  { %716 = vmatprep.subr.bf16.mxu0 %v1260_v11  ;;  %758 = vmatpush1.bf16.msra.mxu1 %v1259_v12  ;;  %v1289_v32 = vld [vmem:[#allocation5 + $0x100] ss:$8 sps:$4 sm:$0xff]   ;;  %v1293_v33 = vld [vmem:[#allocation5 + $0x1f4] ss:$8 sps:$4 sm:$0xff]   ;;  %v1292_v34 = vld [vmem:[#allocation5 + $0xf0] ss:$8 sps:$4 sm:$0xff]  }
  0x35   :  { %759 = vmatprep.subr.bf16.mxu1 %v1263_v13  ;;  %v1296_v35 = vld [vmem:[#allocation5 + $0xe4] ss:$8 sps:$4 sm:$0xff]   ;;  %v1295_v36 = vld [vmem:[#allocation5 + $0x1f0] ss:$8 sps:$4 sm:$0xff]   ;;  %v1298_v38 = vld [vmem:[#allocation5 + $0xe0] ss:$8 sps:$4 sm:$0xff]  }
  0x36   :  { %v1299_v37 = vld [vmem:[#allocation5 + $0x1e4] ss:$8 sps:$4 sm:$0xff]   ;;  %v1302_v39 = vld [vmem:[#allocation5 + $0xd4] ss:$8 sps:$4 sm:$0xff]   ;;  %v1301_v40 = vld [vmem:[#allocation5 + $0x1e0] ss:$8 sps:$4 sm:$0xff]  }
  0x37   :  { %717 = vmatpush1.bf16.msra.mxu0 %v1262_v14  ;;  %v1305_v41 = vld [vmem:[#allocation5 + $0x1d4] ss:$8 sps:$4 sm:$0xff]   ;;  %v1304_v42 = vld [vmem:[#allocation5 + $0xd0] ss:$8 sps:$4 sm:$0xff]   ;;  %v1308_v43 = vld [vmem:[#allocation5 + $0xc4] ss:$8 sps:$4 sm:$0xff]  }
  0x38   :  { %718 = vmatprep.subr.bf16.mxu0 %v1266_v15  ;;  %760 = vmatpush1.bf16.msra.mxu1 %v1265_v16  ;;  %v1307_v44 = vld [vmem:[#allocation5 + $0x1d0] ss:$8 sps:$4 sm:$0xff]   ;;  %v1311_v45 = vld [vmem:[#allocation5 + $0x1c4] ss:$8 sps:$4 sm:$0xff]   ;;  %v1310_v46 = vld [vmem:[#allocation5 + $0xc0] ss:$8 sps:$4 sm:$0xff]  }
  0x39   :  { %761 = vmatprep.subr.bf16.mxu1 %v1269_v17  ;;  %v1339_v47 = vld [vmem:[#allocation2 + $0x4] ss:$28 sps:$4 sm:$0xff]   ;;  %v1314_v48 = vld [vmem:[#allocation5 + $0xb4] ss:$8 sps:$4 sm:$0xff]   ;;  %v1316_v52 = vld [vmem:[#allocation5 + $0xb0] ss:$8 sps:$4 sm:$0xff]  }
  0x3a   :  { %v1313_v49 = vld [vmem:[#allocation5 + $0x1c0] ss:$8 sps:$4 sm:$0xff]   ;;  %742 = vmatprep.mubr.bf16.mxu0 %v1339_v47  ;;  %v1317_v50 = vld [vmem:[#allocation5 + $0x1b4] ss:$8 sps:$4 sm:$0xff]   ;;  %v1320_v53 = vld [vmem:[#allocation5 + $0xa4] ss:$8 sps:$4 sm:$0xff]  }
  0x3b   :  { %719 = vmatpush1.bf16.msra.mxu0 %v1268_v18  ;;  %v1346_v51 = vld [vmem:[#allocation2 + $0xc] ss:$28 sps:$4 sm:$0xff]   ;;  %v1323_v55 = vld [vmem:[#allocation5 + $0x1a4] ss:$8 sps:$4 sm:$0xff]   ;;  %v1322_v56 = vld [vmem:[#allocation5 + $0xa0] ss:$8 sps:$4 sm:$0xff]  }
  0x3c   :  { %720 = vmatprep.subr.bf16.mxu0 %v1272_v19  ;;  %762 = vmatpush1.bf16.msra.mxu1 %v1271_v20  ;;  %v1319_v54 = vld [vmem:[#allocation5 + $0x1b0] ss:$8 sps:$4 sm:$0xff]   ;;  %v1326_v57 = vld [vmem:[#allocation5 + $0x94] ss:$8 sps:$4 sm:$0xff]   ;;  %v1325_v58 = vld [vmem:[#allocation5 + $0x1a0] ss:$8 sps:$4 sm:$0xff]  }
  0x3d   :  { %763 = vmatprep.subr.bf16.mxu1 %v1275_v21  ;;  %785 = vmatprep.mubr.bf16.mxu1 %v1346_v51  ;;  %v1329_v59 = vld [vmem:[#allocation5 + $0x194] ss:$8 sps:$4 sm:$0xff]   ;;  %v1328_v60 = vld [vmem:[#allocation5 + $0x90] ss:$8 sps:$4 sm:$0xff]   ;;  %v1332_v61 = vld [vmem:[#allocation5 + $0x84] ss:$8 sps:$4 sm:$0xff]  }
  0x3e   :  { %v1331_v62 = vld [vmem:[#allocation5 + $0x190] ss:$8 sps:$4 sm:$0xff]   ;;  %v1335_v63 = vld [vmem:[#allocation5 + $0x184] ss:$8 sps:$4 sm:$0xff]   ;;  %v1334_v0 = vld [vmem:[#allocation5 + $0x80] ss:$8 sps:$4 sm:$0xff]  }
  0x3f   :  { %721 = vmatpush1.bf16.msra.mxu0 %v1274_v22  ;;  %v1343_v1 = vld [vmem:[#allocation5 + $0x274] ss:$8 sps:$4 sm:$0xff]   ;;  %v1340_v2 = vld [vmem:[#allocation5 + $0x180] ss:$8 sps:$4 sm:$0xff]   ;;  %v1341_v4 = vld [vmem:[#allocation5 + $0x270] ss:$8 sps:$4 sm:$0xff]  }
  0x40   :  { %722 = vmatprep.subr.bf16.mxu0 %v1278_v23  ;;  %764 = vmatpush1.bf16.msra.mxu1 %v1277_v24  ;;  %v1337_v3 = vld [vmem:[#allocation2] ss:$28 sps:$4 sm:$0xff]   ;;  %v1344_v5 = vld [vmem:[#allocation2 + $0x8] ss:$28 sps:$4 sm:$0xff]   ;;  %v1352_v10 = vld [vmem:[#allocation5 + $0x254] ss:$8 sps:$4 sm:$0xff]  }
  0x41   :  { %765 = vmatprep.subr.bf16.mxu1 %v1281_v25  ;;  %v1349_v6 = vld [vmem:[#allocation5 + $0x264] ss:$8 sps:$4 sm:$0xff]   ;;  %v1389_v7 = vld [vmem:[#allocation5 + $0x300] ss:$8 sps:$4 sm:$0xff]   ;;  %v1350_v11 = vld [vmem:[#allocation5 + $0x250] ss:$8 sps:$4 sm:$0xff]  }
  0x42   :  { %v1391_v8 = vld [vmem:[#allocation5 + $0x304] ss:$8 sps:$4 sm:$0xff]   ;;  %v1347_v9 = vld [vmem:[#allocation5 + $0x260] ss:$8 sps:$4 sm:$0xff]   ;;  %v1510_v12 = vmov 0   ;;  %vm706_vm0 = vcmask 130048  }
  0x43   :  { %723 = vmatpush1.bf16.msra.mxu0 %v1280_v26  ;;  %v1355_v13 = vld [vmem:[#allocation5 + $0x244] ss:$8 sps:$4 sm:$0xff]   ;;  %v1395_v14 = vld [vmem:[#allocation2 + $0x18] ss:$28 sps:$4 sm:$0xff]   ;;  %v1356_v18 = vld [vmem:[#allocation5 + $0x230] ss:$8 sps:$4 sm:$0xff]  }
  0x44   :  { %724 = vmatprep.subr.bf16.mxu0 %v1284_v27  ;;  %766 = vmatpush1.bf16.msra.mxu1 %v1283_v28  ;;  %v1398_v15 = vld [vmem:[#allocation2 + $0x14] ss:$28 sps:$4 sm:$0xff]   ;;  %v1353_v16 = vld [vmem:[#allocation5 + $0x240] ss:$8 sps:$4 sm:$0xff]   ;;  %v1361_v19 = vld [vmem:[#allocation5 + $0x224] ss:$8 sps:$4 sm:$0xff]  }
  0x45   :  { %767 = vmatprep.subr.bf16.mxu1 %v1287_v29  ;;  %v1358_v17 = vld [vmem:[#allocation5 + $0x234] ss:$8 sps:$4 sm:$0xff]   ;;  %v1359_v20 = vld [vmem:[#allocation5 + $0x220] ss:$8 sps:$4 sm:$0xff]   ;;  %v1362_v22 = vld [vmem:[#allocation5 + $0x210] ss:$8 sps:$4 sm:$0xff]  }
  0x46   :  { %v1364_v21 = vld [vmem:[#allocation5 + $0x214] ss:$8 sps:$4 sm:$0xff]   ;;  %v1367_v23 = vld [vmem:[#allocation5 + $0x204] ss:$8 sps:$4 sm:$0xff]   ;;  %v1365_v24 = vld [vmem:[#allocation5 + $0x200] ss:$8 sps:$4 sm:$0xff]  }
  0x47   :  { %725 = vmatpush1.bf16.msra.mxu0 %v1286_v30  ;;  %v1370_v25 = vld [vmem:[#allocation5 + $0x2f4] ss:$8 sps:$4 sm:$0xff]   ;;  %v1368_v26 = vld [vmem:[#allocation5 + $0x2f0] ss:$8 sps:$4 sm:$0xff]   ;;  %v1373_v27 = vld [vmem:[#allocation5 + $0x2e4] ss:$8 sps:$4 sm:$0xff]  }
  0x48   :  { %726 = vmatprep.subr.bf16.mxu0 %v1290_v31  ;;  %768 = vmatpush1.bf16.msra.mxu1 %v1289_v32  ;;  %v1371_v28 = vld [vmem:[#allocation5 + $0x2e0] ss:$8 sps:$4 sm:$0xff]   ;;  %v1376_v29 = vld [vmem:[#allocation5 + $0x2d4] ss:$8 sps:$4 sm:$0xff]   ;;  %v1374_v30 = vld [vmem:[#allocation5 + $0x2d0] ss:$8 sps:$4 sm:$0xff]  }
  0x49   :  { %769 = vmatprep.subr.bf16.mxu1 %v1293_v33  ;;  %v1379_v31 = vld [vmem:[#allocation5 + $0x2c4] ss:$8 sps:$4 sm:$0xff]   ;;  %v1377_v32 = vld [vmem:[#allocation5 + $0x2c0] ss:$8 sps:$4 sm:$0xff]   ;;  %v1382_v33 = vld [vmem:[#allocation5 + $0x2b4] ss:$8 sps:$4 sm:$0xff]  }
  0x4a   :  { %v1404_v47 = vld [vmem:[#allocation7 + $0x28] sm:$0xff]   ;;  %v1408_v51 = vld [vmem:[#allocation7 + $0x18] sm:$0xff]   ;;  %s1511_s14 = smov [#allocation8]  }
  0x4b   :  { %727 = vmatpush2.bf16.msra.mxu0 %v1292_v34  ;;  %v1380_v34 = vld [vmem:[#allocation5 + $0x2b0] ss:$8 sps:$4 sm:$0xff]   ;;  %s1073_s15 = sshll.u32 %s1511_s14, 4  ;;  %s1074_s15 = int_to_ptr.vmem [resolvable:$true] %s1073_s15 }
  0x4c   :  { %728 = vmatprep.subr.bf16.mxu0 %v1296_v35  ;;  %770 = vmatpush2.bf16.msra.mxu1 %v1295_v36  ;;  %v1385_v35 = vld [vmem:[#allocation5 + $0x2a4] ss:$8 sps:$4 sm:$0xff]   ;;  %v1383_v36 = vld [vmem:[#allocation5 + $0x2a0] ss:$8 sps:$4 sm:$0xff]   ;;  %s1475_s16 = scalar_lea.vmem %s1074_s15, 256  ;;  %p1480_p2 = scmp.lt.s32.totalorder %s1074_s15, %s1074_s15 }
  0x4d   :  { %771 = vmatprep.subr.bf16.mxu1 %v1299_v37  ;;  %v1388_v37 = vld [vmem:[#allocation5 + $0x294] ss:$8 sps:$4 sm:$0xff]   ;;  %p1476_p1 = scmp.ne.s32.totalorder %s1074_s15, %s1475_s16  ;;  %p1481_p3 = scmp.lt.s32.totalorder %s1475_s16, %s1475_s16 }
  0x4f   :  { %729 = vmatpush2.bf16.msra.mxu0 %v1298_v38  ;;  %v1386_v38 = vld [vmem:[#allocation5 + $0x290] ss:$8 sps:$4 sm:$0xff]   ;;  %p1482_p4 = por %p1481_p3, %p1480_p2 }
  0x50   :  { %730 = vmatprep.subr.bf16.mxu0 %v1302_v39  ;;  %772 = vmatpush2.bf16.msra.mxu1 %v1301_v40  ;;  %v1394_v39 = vld [vmem:[#allocation5 + $0x284] ss:$8 sps:$4 sm:$0xff]   ;;  %v1392_v40 = vld [vmem:[#allocation5 + $0x280] ss:$8 sps:$4 sm:$0xff]  }
  0x51   :  { %773 = vmatprep.subr.bf16.mxu1 %v1305_v41  ;;  %v1396_v41 = vld [vmem:[#allocation2 + $0x10] ss:$28 sps:$4 sm:$0xff]   ;;  %p1483_p5 = pnand %p1482_p4, %p1476_p1 }
  0x53   :  { %731 = vmatpush2.bf16.msra.mxu0 %v1304_v42  ;;  %v1399_v42 = vld [vmem:[#allocation7 + $0x78] sm:$0xff]  }
  0x54   :  { %732 = vmatprep.subr.bf16.mxu0 %v1308_v43  ;;  %774 = vmatpush2.bf16.msra.mxu1 %v1307_v44  ;;  %v1400_v43 = vld [vmem:[#allocation7 + $0x38] sm:$0xff]   ;;  %v1401_v44 = vld [vmem:[#allocation7 + $0x70] sm:$0xff]  }
  0x55   :  { %775 = vmatprep.subr.bf16.mxu1 %v1311_v45  ;;  %v1402_v45 = vld [vmem:[#allocation7 + $0x30] sm:$0xff]  }
  0x57   :  { %733 = vmatpush2.bf16.msra.mxu0 %v1310_v46  ;;  %v1403_v46 = vld [vmem:[#allocation7 + $0x68] sm:$0xff]  }
  0x58   :  { %734 = vmatprep.subr.bf16.mxu0 %v1314_v48  ;;  %776 = vmatpush2.bf16.msra.mxu1 %v1313_v49  ;;  %v1405_v48 = vld [vmem:[#allocation7 + $0x60] sm:$0xff]  }
  0x59   :  { %777 = vmatprep.subr.bf16.mxu1 %v1317_v50  ;;  %v1406_v49 = vld [vmem:[#allocation7 + $0x20] sm:$0xff]   ;;  %v1407_v50 = vld [vmem:[#allocation7 + $0x58] sm:$0xff]  }
  0x5b   :  { %735 = vmatpush2.bf16.msra.mxu0 %v1316_v52  ;;  %v1409_v52 = vld [vmem:[#allocation7 + $0x50] sm:$0xff]  }
  0x5c   :  { %736 = vmatprep.subr.bf16.mxu0 %v1320_v53  ;;  %778 = vmatpush2.bf16.msra.mxu1 %v1319_v54  ;;  %v1410_v53 = vld [vmem:[#allocation7 + $0x10] sm:$0xff]   ;;  %v1411_v54 = vld [vmem:[#allocation7 + $0x48] sm:$0xff]  }
  0x5d   :  { %779 = vmatprep.subr.bf16.mxu1 %v1323_v55  ;;  %v1412_v55 = vld [vmem:[#allocation7 + $0x8] sm:$0xff]  }
  0x5f   :  { %737 = vmatpush2.bf16.msra.mxu0 %v1322_v56  ;;  %v1413_v56 = vld [vmem:[#allocation7 + $0x40] sm:$0xff]  }
  0x60   :  { %738 = vmatprep.subr.bf16.mxu0 %v1326_v57  ;;  %780 = vmatpush2.bf16.msra.mxu1 %v1325_v58  ;;  %v1414_v57 = vld [vmem:[#allocation7] sm:$0xff]   ;;  %v171_v58 = vlaneseq }
  0x61   :  { %781 = vmatprep.subr.bf16.mxu1 %v1329_v59 }
  0x63   :  { %739 = vmatpush2.bf16.msra.mxu0 %v1328_v60  ;;  %v172_v60 = vshrl.u32 %v171_v58, 7 }
  0x64   :  { %740 = vmatprep.subr.bf16.mxu0 %v1332_v61  ;;  %782 = vmatpush2.bf16.msra.mxu1 %v1331_v62 }
  0x65   :  { %783 = vmatprep.subr.bf16.mxu1 %v1335_v63  ;;  %v177_v63 = vsub.s32 1, %v172_v60 }
  0x67   :  { %741 = vmatpush2.bf16.msra.mxu0 %v1334_v0  ;;  %v169_v0 = vld [vmem:[%s1568_s2] sm:$0x3] }
  0x68   :  { %796 = vmatprep.subr.bf16.mxu0 %v1343_v1  ;;  %784 = vmatpush2.bf16.msra.mxu1 %v1340_v2  ;;  %v173_v1 = vsub.s32 0, %v172_v60 }
  0x69   :  { %853 = vmatprep.subr.bf16.mxu1 %v1391_v8 }
  0x6a   :  { %743 = vmatmul.mubr.bf16.vlgmr.msra.gmra.mxu0 %v1337_v3 }
  0x6b   :  { %797 = vmatpush1.bf16.msra.mxu0 %v1341_v4  ;;  %786 = vmatmul.mubr.bf16.vlgmr.msra.gmra.mxu1 %v1344_v5  ;;  %v178_v4 = vrot.slane %v169_v0, %v177_v63  ;;  %v174_v5 = vrot.slane %v169_v0, %v173_v1 }
  0x6c   :  { %798 = vmatprep.subr.bf16.mxu0 %v1349_v6  ;;  %871 = vmatprep.mubr.bf16.mxu1 %v1510_v12 }
  0x6d   :  { %854 = vmatpush1.bf16.msra.mxu1 %v1389_v7  ;;  %828 = vmatprep.mubr.bf16.mxu0 %v1398_v15 }
  0x6e   :  { %1209 = vmatprep.subr.bf16.mxu1 %v1399_v42 }
  0x6f   :  { %799 = vmatpush1.bf16.msra.mxu0 %v1347_v9 }
  0x70   :  { %800 = vmatprep.subr.bf16.mxu0 %v1352_v10 }
  0x73   :  { %801 = vmatpush1.bf16.msra.mxu0 %v1350_v11  ;;  %1191 = vmatmul.mubr.msk.bf16.vlgmr.msra.gmra.mxu1 %vm706_vm0, %v1395_v14 }
  0x74   :  { %802 = vmatprep.subr.bf16.mxu0 %v1355_v13  ;;  %1210 = vmatpush3.bf16.msra.mxu1 %v1400_v43 }
  0x75   :  { %1211 = vmatprep.subr.bf16.mxu1 %v1401_v44 }
  0x77   :  { %803 = vmatpush1.bf16.msra.mxu0 %v1353_v16 }
  0x78   :  { %804 = vmatprep.subr.bf16.mxu0 %v1358_v17  ;;  %1212 = vmatpush3.bf16.msra.mxu1 %v1402_v45 }
  0x79   :  { %1213 = vmatprep.subr.bf16.mxu1 %v1403_v46 }
  0x7b   :  { %805 = vmatpush1.bf16.msra.mxu0 %v1356_v18 }
  0x7c   :  { %806 = vmatprep.subr.bf16.mxu0 %v1361_v19  ;;  %1214 = vmatpush3.bf16.msra.mxu1 %v1404_v47 }
  0x7d   :  { %1215 = vmatprep.subr.bf16.mxu1 %v1405_v48 }
  0x7f   :  { %807 = vmatpush1.bf16.msra.mxu0 %v1359_v20 }
  0x80   :  { %808 = vmatprep.subr.bf16.mxu0 %v1364_v21  ;;  %1216 = vmatpush3.bf16.msra.mxu1 %v1406_v49 }
  0x81   :  { %1217 = vmatprep.subr.bf16.mxu1 %v1407_v50 }
  0x83   :  { %809 = vmatpush1.bf16.msra.mxu0 %v1362_v22 }
  0x84   :  { %810 = vmatprep.subr.bf16.mxu0 %v1367_v23  ;;  %1218 = vmatpush3.bf16.msra.mxu1 %v1408_v51 }
  0x85   :  { %1219 = vmatprep.subr.bf16.mxu1 %v1409_v52 }
  0x87   :  { %811 = vmatpush1.bf16.msra.mxu0 %v1365_v24 }
  0x88   :  { %812 = vmatprep.subr.bf16.mxu0 %v1370_v25  ;;  %1220 = vmatpush3.bf16.msra.mxu1 %v1410_v53 }
  0x89   :  { %1221 = vmatprep.subr.bf16.mxu1 %v1411_v54 }
  0x8b   :  { %813 = vmatpush2.bf16.msra.mxu0 %v1368_v26 }
  0x8c   :  { %814 = vmatprep.subr.bf16.mxu0 %v1373_v27  ;;  %1222 = vmatpush3.bf16.msra.mxu1 %v1412_v55 }
  0x8d   :  { %1223 = vmatprep.subr.bf16.mxu1 %v1413_v56 }
  0x8f   :  { %815 = vmatpush2.bf16.msra.mxu0 %v1371_v28 }
  0x90   :  { %816 = vmatprep.subr.bf16.mxu0 %v1376_v29  ;;  %1224 = vmatpush3.bf16.msra.mxu1 %v1414_v57 }
  0x93   :  { %817 = vmatpush2.bf16.msra.mxu0 %v1374_v30 }
  0x94   :  { %818 = vmatprep.subr.bf16.mxu0 %v1379_v31 }
  0x97   :  { %819 = vmatpush2.bf16.msra.mxu0 %v1377_v32 }
  0x98   :  { %820 = vmatprep.subr.bf16.mxu0 %v1382_v33 }
  0x9b   :  { %821 = vmatpush2.bf16.msra.mxu0 %v1380_v34 }
  0x9c   :  { %822 = vmatprep.subr.bf16.mxu0 %v1385_v35 }
  0x9f   :  { %823 = vmatpush2.bf16.msra.mxu0 %v1383_v36 }
  0xa0   :  { %824 = vmatprep.subr.bf16.mxu0 %v1388_v37 }
  0xa3   :  { %825 = vmatpush2.bf16.msra.mxu0 %v1386_v38 }
  0xa4   :  { %826 = vmatprep.subr.bf16.mxu0 %v1394_v39 }
  0xa7   :  { %827 = vmatpush2.bf16.msra.mxu0 %v1392_v40  ;;  %v1192_v40 = vld [vmem:[%s1570_s4] ss:$0 sm:$0xff] }
  0xaa   :  { %829 = vmatmul.mubr.bf16.vlgmr.msra.gmra.mxu0 %v1396_v41 }
 0x12a   :  { %v744_v61 = vpop.f32.mrf.mxu0 }
 0x12b   :  { %v787_v59 = vpop.f32.mrf.mxu1  ;;  %v745_v10 = vadd.f32 %v744_v61, %v174_v5 }
 0x12c   :  { %v746_v2 = vpop.f32.mrf.mxu0 }
 0x12d   :  { %v789_v62 = vpop.f32.mrf.mxu1  ;;  %v747_v9 = vadd.f32 %v746_v2, %v178_v4  ;;  %v788_v17 = vadd.f32 %v787_v59, %v745_v10 }
 0x12e   :  { %v748_v6 = vpop.f32.mrf.mxu0 }
 0x12f   :  { %v791_v3 = vpop.f32.mrf.mxu1  ;;  %v749_v12 = vadd.f32 %v748_v6, %v174_v5  ;;  %v790_v15 = vadd.f32 %v789_v62, %v747_v9 }
 0x130   :  { %v750_v11 = vpop.f32.mrf.mxu0 }
 0x131   :  { %v793_v7 = vpop.f32.mrf.mxu1  ;;  %v751_v16 = vadd.f32 %v750_v11, %v178_v4  ;;  %v792_v19 = vadd.f32 %v791_v3, %v749_v12 }
 0x133   :  { %v873_v8 = vpop.f32.mrf.mxu1  ;;  %v794_v24 = vadd.f32 %v793_v7, %v751_v16 }
 0x135   :  { %v875_v13 = vpop.f32.mrf.mxu1 }
 0x137   :  { %v877_v22 = vpop.f32.mrf.mxu1 }
 0x139   :  { %v879_v31 = vpop.f32.mrf.mxu1 }
 0x16a   :  { %v830_v14 = vpop.f32.mrf.mxu0 }
 0x16b   :  { %v831_v21 = vadd.f32 %v830_v14, %v788_v17 }
 0x16c   :  { %v832_v18 = vpop.f32.mrf.mxu0 }
 0x16d   :  { %v833_v20 = vadd.f32 %v832_v18, %v790_v15  ;;  %v874_v30 = vadd.f32 %v873_v8, %v831_v21 }
 0x16e   :  { %v834_v23 = vpop.f32.mrf.mxu0 }
 0x16f   :  { %v835_v25 = vadd.f32 %v834_v23, %v792_v19  ;;  %v876_v27 = vadd.f32 %v875_v13, %v833_v20  ;;  %v882_v36 = vmax.f32 %v874_v30, 0.0 }
 0x170   :  { %v836_v26 = vpop.f32.mrf.mxu0 }
 0x171   :  { %v878_v28 = vadd.f32 %v877_v22, %v835_v25  ;;  %v837_v29 = vadd.f32 %v836_v26, %v794_v24  ;;  %v883_v34 = vmax.f32 %v876_v27, 0.0 }
 0x173   :  { %v880_v32 = vadd.f32 %v879_v31, %v837_v29  ;;  %v884_v33 = vmax.f32 %v878_v28, 0.0 }
 0x175   :  { %v885_v35 = vmax.f32 %v880_v32, 0.0  ;;  %v886_v38 = vpack.c.bf16 %v884_v33, %v882_v36 }
 0x177   :  { %v887_v37 = vpack.c.bf16 %v885_v35, %v883_v34 }
 0x179   :  { %1055 = vmatprep.mubr.bf16.mxu1 %v887_v37 }
 0x17a   :  { %1056 = vmatmul.mubr.bf16.vlgmr.msra.gmra.mxu1 %v886_v38 }
 0x23a   :  { %v1225_v39 = vpop.f32.mrf.mxu1 }
 0x23c   :  { %v1226_v41 = vpop.f32.mrf.mxu1 }
 0x23d   :  { %v1227_v42 = vadd.f32 %v1226_v41, %v1225_v39 }
 0x23e   :  { %v1228_v43 = vpop.f32.mrf.mxu1 }
 0x23f   :  { %v1058_v44 = vadd.f32 %v1227_v42, %v1192_v40 }
 0x240   :  { %v1229_v45 = vpop.f32.mrf.mxu1 }
 0x241   :  { %v1064_v46 = vmax.f32 %v1058_v44, 0.0  ;;  %v1230_v47 = vadd.f32 %v1229_v45, %v1228_v43 }
 0x243   :  { %1066 = vst [vmem:[#allocation8] sm:$0xff] %v1064_v46  ;;  %v1061_v48 = vadd.f32 %v1230_v47, %v1192_v40 }
 0x245   :  { %v1065_v49 = vmax.f32 %v1061_v48, 0.0 }
 0x247   :  { %1067 = vst [vmem:[#allocation8 + $0x8] sm:$0xff] %v1065_v49 }
 0x248   :  { %1486 = shalt.err (!%p1483_p5)
}
 0x249   :  { %1079 = dma.vmem_to_hbm [thread:$0]  %s1074_s15, 256, %s1571_s5, [#allocation4], %s1502_s21, %s1502_s21, %s1503_s22  }
 0x24a   :  { %1499 = dma.done.wait [#allocation4], 256  }
 0x24b   :  { %1500 = vsyncadd [#allocation4], 4294967040 }
 0x24c   :  { %1083 = vsyncpa [#allocation3], 1 }
 0x24d   :  { %1084 = vsyncpa [#allocation6], 1 }
 0x24e   :  { %1085 = vsyncpa [#allocation4], 1 }

</bundles_post_ra>
